<compile_context>
chip_gen: v5e
topology: v5e:2x2
jax: 0.10.0
libtpu: 0.0.40
codegen_flags: <defaults>
</compile_context>

<pallas_src>
import math

import jax
import jax.numpy as jnp
from jax.experimental import pallas as pl
from jax.experimental.pallas import tpu as pltpu


def _rup(x, m):
    return ((x + m - 1) // m) * m


# ----------------------------------------------------------------------------
# Fused kernel: y = GELU(x @ W1 + b1) @ W2 + b2   (per voxel-row tile)
# ----------------------------------------------------------------------------
def _fused_mlp_kernel(x_ref, w1_ref, b1_ref, w2_ref, b2_ref, o_ref):
    # x_ref : (tm, C)  bf16      w1_ref: (C, Hp) bf16     b1_ref: (1, Hp) f32
    # w2_ref: (Hp, C)  bf16      b2_ref: (1, C)  f32      o_ref : (tm, C)
    h = jnp.dot(x_ref[...], w1_ref[...], preferred_element_type=jnp.float32)
    h = h + b1_ref[...]
    # TODO(synk): tanh-approx GELU inside the kernel; PyTorch nn.GELU() default
    #             is erf-based (expect ~1e-3-level per-element divergence).
    h = 0.5 * h * (1.0 + jnp.tanh(0.7978845608028654 * (h + 0.044715 * h * h * h)))
    y = jnp.dot(h.astype(jnp.bfloat16), w2_ref[...],
                preferred_element_type=jnp.float32)
    o_ref[...] = (y + b2_ref[...]).astype(o_ref.dtype)


def fused_channel_mlp(rows, params, *, tm=None, out_dtype=jnp.float32):
    """rows: (M, C) bf16 -> (M, C) out_dtype = fc2(gelu(fc1(rows)))."""
    M, C = rows.shape
    _, Hp = params["w1"].shape           # mlp dim pre-padded to 128-multiple

    if tm is None:
        # Aim for >=8 grid steps (keeps both v7x TCs fed with >=4 steps each,
        # and amortizes the ~0.35us/step overhead on 1-TC v5e/v6e for large M).
        tm = max(128, min(1024, _rup(pl.cdiv(M, 8), 16)))
    tm = _rup(min(tm, _rup(M, 16)), 16)   # 16-aligned (bf16 (16,128) packing)
    grid = (pl.cdiv(M, tm),)              # partial last block is masked

    w_bytes = ((params["w1"].size + params["w2"].size) * 2
               + (params["b1"].size + params["b2"].size) * 4)
    cost = pl.CostEstimate(
        flops=4 * M * C * Hp,                                   # two matmuls
        transcendentals=M * Hp,                                 # tanh
        bytes_accessed=M * C * (rows.dtype.itemsize
                                + jnp.dtype(out_dtype).itemsize) + w_bytes,
    )

    return pl.pallas_call(
        _fused_mlp_kernel,
        out_shape=jax.ShapeDtypeStruct((M, C), out_dtype),
        grid_spec=pltpu.PrefetchScalarGridSpec(
            num_scalar_prefetch=0,
            grid=grid,
            in_specs=[
                pl.BlockSpec((tm, C), lambda i: (i, 0)),   # activations, true C
                pl.BlockSpec((C, Hp), lambda i: (0, 0)),   # W1 (single block)
                pl.BlockSpec((1, Hp), lambda i: (0, 0)),   # b1
                pl.BlockSpec((Hp, C), lambda i: (0, 0)),   # W2 (single block)
                pl.BlockSpec((1, C), lambda i: (0, 0)),    # b2
            ],
            out_specs=pl.BlockSpec((tm, C), lambda i: (i, 0)),
        ),
        compiler_params=pltpu.CompilerParams(
            dimension_semantics=("parallel",)),
        cost_estimate=cost,
    )(rows, params["w1"], params["b1"], params["w2"], params["b2"])


# ----------------------------------------------------------------------------
# Module: init + forward (NCDHW boundary, like the PyTorch module)
# ----------------------------------------------------------------------------
def mlp_channel_init(key, hidden_size, mlp_dim):
    """nn.Conv3d(k=1) default init: U(-1/sqrt(fan_in), 1/sqrt(fan_in))."""
    Hp = _rup(mlp_dim, 128)               # pad mlp dim only (VMEM-resident)
    k1, k2, k3, k4 = jax.random.split(key, 4)
    bnd1 = 1.0 / math.sqrt(hidden_size)
    bnd2 = 1.0 / math.sqrt(mlp_dim)
    w1 = jax.random.uniform(k1, (hidden_size, mlp_dim), jnp.float32, -bnd1, bnd1)
    b1 = jax.random.uniform(k2, (mlp_dim,), jnp.float32, -bnd1, bnd1)
    w2 = jax.random.uniform(k3, (mlp_dim, hidden_size), jnp.float32, -bnd2, bnd2)
    b2 = jax.random.uniform(k4, (hidden_size,), jnp.float32, -bnd2, bnd2)
    return dict(
        # lane-dense along the 128-padded mlp dim; padded once at init.
        w1=jnp.pad(w1, ((0, 0), (0, Hp - mlp_dim))).astype(jnp.bfloat16),
        b1=jnp.pad(b1, ((0, Hp - mlp_dim),)).reshape(1, Hp).astype(jnp.float32),
        w2=jnp.pad(w2, ((0, Hp - mlp_dim), (0, 0))).astype(jnp.bfloat16),
        b2=b2.reshape(1, hidden_size).astype(jnp.float32),
        # unpadded f32 copies (only for the pure-JAX reference check)
        w1_f32=w1, b1_f32=b1, w2_f32=w2, b2_f32=b2,
    )


def mlp_channel_forward(params, x, *, tm=None, out_dtype=jnp.float32):
    """x: (B, C, D, H, W) float32 (PyTorch NCDHW layout)."""
    B, C, D, H, W = x.shape
    # One transpose pair at the module boundary; bf16 cast fused into the copy.
    rows = jnp.transpose(x, (0, 2, 3, 4, 1)).reshape(B * D * H * W, C)
    rows = rows.astype(jnp.bfloat16)
    out = fused_channel_mlp(rows, params, tm=tm, out_dtype=out_dtype)
    return jnp.transpose(out.reshape(B, D, H, W, C), (0, 4, 1, 2, 3))


def mlp_channel_reference(params, x):
    """Pure-JAX f32 reference (same tanh-GELU) for a tolerance check."""
    B, C, D, H, W = x.shape
    rows = jnp.transpose(x, (0, 2, 3, 4, 1)).reshape(-1, C)
    h = rows @ params["w1_f32"] + params["b1_f32"]
    h = 0.5 * h * (1.0 + jnp.tanh(0.7978845608028654 * (h + 0.044715 * h * h * h)))
    y = h @ params["w2_f32"] + params["b2_f32"]
    return jnp.transpose(y.reshape(B, D, H, W, C), (0, 4, 1, 2, 3))


# ----------------------------------------------------------------------------
# Main
# ----------------------------------------------------------------------------
if __name__ == "__main__":
    key = jax.random.PRNGKey(0)
    kp, kx = jax.random.split(key)

    hidden_size, mlp_dim = 48, 96          # MlpChannel(dim, 2*dim) as in the network
    B, D, H, W = 2, 8, 8, 8                # M = 1024 voxel rows -> 8 grid steps @ tm=128

    params = mlp_channel_init(kp, hidden_size, mlp_dim)
    x = jax.random.normal(kx, (B, hidden_size, D, H, W), jnp.float32)

    fwd = jax.jit(mlp_channel_forward)
    out = jax.block_until_ready(fwd(params, x))
    assert out.shape == (B, hidden_size, D, H, W)
    assert out.dtype == jnp.float32

    ref = mlp_channel_reference(params, x)
    err = float(jnp.max(jnp.abs(out - ref)))
    assert err < 5e-2, f"max abs error {err}"

    print("KERNEL_OK")
</pallas_src>

<mosaic_0001>
module attributes {stable_mosaic.version = 11 : i64} {
  func.func @_fused_mlp_kernel(%arg0: i32, %arg1: memref<128x48xbf16, #tpu.memory_space<vmem>>, %arg2: memref<48x128xbf16, #tpu.memory_space<vmem>>, %arg3: memref<1x128xf32, #tpu.memory_space<vmem>>, %arg4: memref<128x48xbf16, #tpu.memory_space<vmem>>, %arg5: memref<1x48xf32, #tpu.memory_space<vmem>>, %arg6: memref<128x48xf32, #tpu.memory_space<vmem>>) attributes {dimension_semantics = [#tpu.dimension_semantics<parallel>], iteration_bounds = array<i64: 8>, scalar_prefetch = 0 : i64, scratch_operands = 0 : i64, tpu.core_type = #tpu.core_type<tc>, window_params = [{transform_indices = @transform_0, window_bounds = array<i64: 128, 48>}, {pipeline_mode = #tpu.pipeline_mode<synchronous>, transform_indices = @transform_1, window_bounds = array<i64: 48, 128>}, {pipeline_mode = #tpu.pipeline_mode<synchronous>, transform_indices = @transform_2, window_bounds = array<i64: 1, 128>}, {pipeline_mode = #tpu.pipeline_mode<synchronous>, transform_indices = @transform_3, window_bounds = array<i64: 128, 48>}, {pipeline_mode = #tpu.pipeline_mode<synchronous>, transform_indices = @transform_4, window_bounds = array<i64: 1, 48>}, {transform_indices = @transform_5, window_bounds = array<i64: 128, 48>}]} {
    %c0 = arith.constant 0 : index
    %c0_0 = arith.constant 0 : index
    %0 = vector.load %arg1[%c0, %c0_0] : memref<128x48xbf16, #tpu.memory_space<vmem>>, vector<128x48xbf16>
    %c0_1 = arith.constant 0 : index
    %c0_2 = arith.constant 0 : index
    %1 = vector.load %arg2[%c0_1, %c0_2] : memref<48x128xbf16, #tpu.memory_space<vmem>>, vector<48x128xbf16>
    %cst = arith.constant dense<0.000000e+00> : vector<128x128xf32>
    %2 = tpu.matmul %0, %1, %cst {dimension_numbers = #tpu.dot_dimension_numbers<[1], [0], [0], [1], [0, 0, 1, 1], [], []>} : vector<128x48xbf16>, vector<48x128xbf16>, vector<128x128xf32> -> vector<128x128xf32>
    %c0_3 = arith.constant 0 : index
    %c0_4 = arith.constant 0 : index
    %3 = vector.load %arg3[%c0_3, %c0_4] : memref<1x128xf32, #tpu.memory_space<vmem>>, vector<1x128xf32>
    %4 = vector.broadcast %3 : vector<1x128xf32> to vector<128x128xf32>
    %5 = arith.addf %2, %4 : vector<128x128xf32>
    %cst_5 = arith.constant 5.000000e-01 : f32
    %6 = vector.broadcast %cst_5 : f32 to vector<128x128xf32>
    %7 = arith.mulf %6, %5 : vector<128x128xf32>
    %cst_6 = arith.constant 4.471500e-02 : f32
    %8 = vector.broadcast %cst_6 : f32 to vector<128x128xf32>
    %9 = arith.mulf %8, %5 : vector<128x128xf32>
    %10 = arith.mulf %9, %5 : vector<128x128xf32>
    %11 = arith.mulf %10, %5 : vector<128x128xf32>
    %12 = arith.addf %5, %11 : vector<128x128xf32>
    %cst_7 = arith.constant 0.797884583 : f32
    %13 = vector.broadcast %cst_7 : f32 to vector<128x128xf32>
    %14 = arith.mulf %13, %12 : vector<128x128xf32>
    %15 = math.tanh %14 : vector<128x128xf32>
    %cst_8 = arith.constant 1.000000e+00 : f32
    %16 = vector.broadcast %cst_8 : f32 to vector<128x128xf32>
    %17 = arith.addf %16, %15 : vector<128x128xf32>
    %18 = arith.mulf %7, %17 : vector<128x128xf32>
    %19 = arith.truncf %18 : vector<128x128xf32> to vector<128x128xbf16>
    %c0_9 = arith.constant 0 : index
    %c0_10 = arith.constant 0 : index
    %20 = vector.load %arg4[%c0_9, %c0_10] : memref<128x48xbf16, #tpu.memory_space<vmem>>, vector<128x48xbf16>
    %cst_11 = arith.constant dense<0.000000e+00> : vector<128x48xf32>
    %21 = tpu.matmul %19, %20, %cst_11 {dimension_numbers = #tpu.dot_dimension_numbers<[1], [0], [0], [1], [0, 0, 1, 1], [], []>} : vector<128x128xbf16>, vector<128x48xbf16>, vector<128x48xf32> -> vector<128x48xf32>
    %c0_12 = arith.constant 0 : index
    %c0_13 = arith.constant 0 : index
    %22 = vector.load %arg5[%c0_12, %c0_13] : memref<1x48xf32, #tpu.memory_space<vmem>>, vector<1x48xf32>
    %23 = vector.broadcast %22 : vector<1x48xf32> to vector<128x48xf32>
    %24 = arith.addf %21, %23 : vector<128x48xf32>
    %c0_14 = arith.constant 0 : index
    %c0_15 = arith.constant 0 : index
    %25 = vector.load %arg6[%c0_14, %c0_15] : memref<128x48xf32, #tpu.memory_space<vmem>>, vector<128x48xf32>
    tpu.vector_store %arg6[%c0_14, %c0_15], %24 {strides = array<i32>} : memref<128x48xf32, #tpu.memory_space<vmem>>, vector<128x48xf32>,
    return
  }
  func.func @transform_0(%arg0: i32) -> (i32, i32) {
    %c0_i32 = arith.constant 0 : i32
    %c0_i32_0 = arith.constant 0 : i32
    return %arg0, %c0_i32 : i32, i32
  }
  func.func @transform_1(%arg0: i32) -> (i32, i32) {
    %c0_i32 = arith.constant 0 : i32
    %c0_i32_0 = arith.constant 0 : i32
    %c0_i32_1 = arith.constant 0 : i32
    return %c0_i32, %c0_i32_0 : i32, i32
  }
  func.func @transform_2(%arg0: i32) -> (i32, i32) {
    %c0_i32 = arith.constant 0 : i32
    %c0_i32_0 = arith.constant 0 : i32
    %c0_i32_1 = arith.constant 0 : i32
    return %c0_i32, %c0_i32_0 : i32, i32
  }
  func.func @transform_3(%arg0: i32) -> (i32, i32) {
    %c0_i32 = arith.constant 0 : i32
    %c0_i32_0 = arith.constant 0 : i32
    %c0_i32_1 = arith.constant 0 : i32
    return %c0_i32, %c0_i32_0 : i32, i32
  }
  func.func @transform_4(%arg0: i32) -> (i32, i32) {
    %c0_i32 = arith.constant 0 : i32
    %c0_i32_0 = arith.constant 0 : i32
    %c0_i32_1 = arith.constant 0 : i32
    return %c0_i32, %c0_i32_0 : i32, i32
  }
  func.func @transform_5(%arg0: i32) -> (i32, i32) {
    %c0_i32 = arith.constant 0 : i32
    %c0_i32_0 = arith.constant 0 : i32
    return %arg0, %c0_i32 : i32, i32
  }
}

</mosaic_0001>

<bundles_post_ra>
// kernel: mlp_channel_forward.1
= control target key start
LH: loop header
LB: loop body
LE: loop exit
PB: predicated region body
PF: predicated region fallthrough
CT: control target
= control target key end

     0   :  { %10 = vsyncpa [#allocation3], 0  ;;  %s1241_s0 = inlined_call_operand.vmem [shape: bf16[1024,48], index: 0, kind: input, shape index: {}]   ;;  %s1242_s1 = inlined_call_operand.vmem [shape: bf16[48,128], index: 1, kind: input, shape index: {}]   ;;  %s1243_s2 = inlined_call_operand.vmem [shape: f32[1,128], index: 2, kind: input, shape index: {}]   ;;  %s1244_s3 = inlined_call_operand.vmem [shape: bf16[128,48], index: 3, kind: input, shape index: {}]   ;;  %s1245_s4 = inlined_call_operand.vmem [shape: f32[1,48], index: 4, kind: input, shape index: {}]   ;;  %s1246_s5 = inlined_call_operand.hbm [shape: f32[1024,48], index: 5, kind: output, shape index: {}]  }
   0x1   :  { %12 = vsyncpa [#allocation3 + $0x1], 0  ;;  %s1046_s18 = smov 0   ;;  %s1048_s19 = smov 0  }
   0x2   :  { %s1050_s20 = smov 0   ;;  %s1052_s21 = smov 0  }
   0x3 LB: > { %s1067_s22 = sadd.s32 4294967295, %s1012_s21   ;;  %s748_s23 = sadd.s32 4294967294, %s1012_s21   ;;  %s1012_s21 = sphi %s1052_s21, %s1252_s21   ;;  %s1008_s20 = sphi %s1050_s20, %s1251_s20   ;;  %s1004_s19 = sphi %s1048_s19, %s1250_s19   ;;  %s1000_s18 = sphi %s1046_s18, %s1249_s18  }
   0x4   : > { %s1071_s24 = sadd.s32 1, %s1012_s21   ;;  %s135_s25 = sadd.s32 1, %s1008_s20 }
   0x5   : > { %s132_s26 = ssub.s32 %s1012_s21, %s1071_s24  ;;  %p145_p0 = scmp.ne.s32.totalorder %s1008_s20, %s1004_s19 }
   0x6   : > { %p133_p1 = scmp.eq.s32.totalorder %s132_s26, 0  ;;  %p146_p2 = scmp.eq.s32.totalorder %s1067_s22, 7 }
   0x7   : > { %p151_p3 = scmp.ne.s32.totalorder %s1004_s19, %s1000_s18  ;;  %p152_p4 = scmp.eq.s32.totalorder %s748_s23, 7 }
   0x8   : > { %s1082_s27 = scalar_select %p133_p1, %s1008_s20, %s135_s25  }
   0x9   : > { %p1084_p5 = por %p146_p2, %p145_p0  ;;  %p1088_p6 = por %p152_p4, %p151_p3 }
   0xa   : > { %p751_p7 = scmp.ge.s32.totalorder %s1012_s21, 1  ;;  %p191_p8 = scmp.lt.s32.totalorder %s1012_s21, 9 }
   0xc   : > { %p192_p9 = pnand %p751_p7, %p191_p8 }
   0xd   : > { %s753_s7 = sshll.u32 (!%p192_p9), %s1067_s22, 4  ;;  %s216_s23 = sand.u32 (!%p192_p9), 1, %s1004_s19  }
   0xe   : > { %195 = sbr.rel (%p192_p9) target bundleno = 448 (0x1c0), region = 40  ;;  %p220_p10 = scmp.lt.s32.totalorder (!%p192_p9), %s753_s7, 127 }
   0xf   : > { %s752_s25 = sshll.u32 (!%p192_p9), %s216_s23, 7  ;;  %s671_s13 = scalar_lea.sflag (!%p192_p9), [#allocation3], %s216_s23 }
  0x10   : > { %s1173_s6 = scalar_lea.vmem (!%p192_p9), [#allocation2], %s752_s25  ;;  %s970_s17 = scalar_lea.hbm (!%p192_p9), %s1246_s5, 1024 }
  0x11   : > { %s683_s11 = sshll.u32 (!%p192_p9), %s1173_s6, 4  ;;  %s684_s11 = int_to_ptr.vmem [resolvable:$true] %s683_s11 }
  0x13   : > { %v854_v0 = vld [vmem:[%s1242_s1 + $0x10] sm:$0xff]  ;;  %v853_v1 = vld [vmem:[%s1242_s1 + $0x8] sm:$0xff]  ;;  %s1254_s7 = smov (!%p220_p10, %s753_s7), 127  ;;  %v852_v2 = vld [vmem:[%s1242_s1] sm:$0xff]  ;;  %vm311_vm0 = vcmask 392192  }
  0x14   : > { %341 = vmatpush.bf16.msra.mxu0 %v854_v0  ;;  %864 = vmatpush.bf16.msra.mxu3 %v854_v0  ;;  %s754_s10 = sshll.u32 %s1254_s7, 2  ;;  %v862_v11 = vld [vmem:[%s1244_s3 + $0x38] sm:$0xff]  ;;  %v861_v12 = vld [vmem:[%s1244_s3 + $0x30] sm:$0xff]  ;;  %v860_v13 = vld [vmem:[%s1244_s3 + $0x28] sm:$0xff]  ;;  %s863_s7 = sshll.u32 %s1067_s22, 7 }
  0x15   : > { %s223_s15 = scalar_lea.vmem %s1241_s0, %s754_s10  ;;  %605 = vmatpush.bf16.msra.mxu1 %v862_v11  ;;  %867 = vmatpush.bf16.msra.mxu2 %v862_v11  ;;  %v859_v14 = vld [vmem:[%s1244_s3 + $0x20] sm:$0xff]  ;;  %v858_v15 = vld [vmem:[%s1244_s3 + $0x18] sm:$0xff]  ;;  %v857_v16 = vld [vmem:[%s1244_s3 + $0x10] sm:$0xff]  ;;  %s682_s10 = scalar_lea.hbm %s1246_s5, %s863_s7 }
  0x16   : > { %v844_v3 = vld [vmem:[%s223_s15] sm:$0xff]  ;;  %v845_v4 = vld [vmem:[%s223_s15 + $0x8] sm:$0xff]  ;;  %v846_v6 = vld [vmem:[%s223_s15 + $0x10] sm:$0xff]  ;;  %s685_s12 = sshll.u32 %s682_s10, 4  ;;  %s686_s12 = int_to_ptr.hbm [resolvable:$true] %s685_s12 }
  0x17   : > { %v849_v5 = vld [vmem:[%s223_s15 + $0x28] sm:$0xff]  ;;  %v850_v7 = vld [vmem:[%s223_s15 + $0x30] sm:$0xff]  ;;  %v847_v8 = vld [vmem:[%s223_s15 + $0x18] sm:$0xff]  ;;  %s964_s22 = sshra.s32 %s686_s12, 4  ;;  %s965_s22 = int_to_ptr.hbm [resolvable:$true] %s964_s22 }
  0x18   : > { %342 = vmatpush.bf16.msra.mxu0 %v853_v1  ;;  %865 = vmatpush.bf16.msra.mxu3 %v853_v1  ;;  %v851_v9 = vld [vmem:[%s223_s15 + $0x38] sm:$0xff]  ;;  %v848_v10 = vld [vmem:[%s223_s15 + $0x20] sm:$0xff]  ;;  %v856_v17 = vld [vmem:[%s1244_s3 + $0x8] sm:$0xff]  ;;  %s966_s14 = scalar_lea.hbm %s965_s22, 128  ;;  %p971_p0 = scmp.lt.s32.totalorder %s965_s22, %s1246_s5 }
  0x19   : > { %606 = vmatpush.bf16.msra.mxu1 %v861_v12  ;;  %868 = vmatpush.bf16.msra.mxu2 %v861_v12  ;;  %v855_v18 = vld [vmem:[%s1244_s3] sm:$0xff]  ;;  %p967_p11 = scmp.ne.s32.totalorder %s965_s22, %s966_s14  ;;  %p972_p1 = scmp.lt.s32.totalorder %s970_s17, %s966_s14 }
  0x1a   : > { %v1142_v19 = vld [vmem:[%s1243_s2] ss:$0 sm:$0xff] }
  0x1b   : > { %p968_p12 = pnand %p967_p11, %p1084_p5  ;;  %p973_p2 = por %p972_p1, %p971_p0 }
  0x1c   : > { %343 = vmatpush.bf16.msra.mxu0 %v852_v2  ;;  %866 = vmatpush.bf16.msra.mxu3 %v852_v2 }
  0x1d   : > { %607 = vmatpush.bf16.msra.mxu1 %v860_v13  ;;  %869 = vmatpush.bf16.msra.mxu2 %v860_v13  ;;  %p969_p13 = pneg %p968_p12 }
  0x1f   : > { %799 = vmatmul.msk.bf16.vlgmr.msra.gmra.mxu0 %vm311_vm0, %v844_v3  ;;  %804 = vmatmul.msk.bf16.vlgmr.msra.gmra.mxu3 %vm311_vm0, %v849_v5  ;;  %p974_p3 = pnand %p973_p2, %p969_p13 }
  0x21   : > { %608 = vmatpush.bf16.msra.mxu1 %v859_v14  ;;  %870 = vmatpush.bf16.msra.mxu2 %v859_v14 }
  0x25   : > { %609 = vmatpush.bf16.msra.mxu1 %v858_v15  ;;  %871 = vmatpush.bf16.msra.mxu2 %v858_v15 }
  0x29   : > { %610 = vmatpush.bf16.msra.mxu1 %v857_v16  ;;  %872 = vmatpush.bf16.msra.mxu2 %v857_v16 }
  0x2d   : > { %611 = vmatpush.bf16.msra.mxu1 %v856_v17  ;;  %873 = vmatpush.bf16.msra.mxu2 %v856_v17 }
  0x2f   : > { %800 = vmatmul.msk.bf16.gmra.mxu0 %vm311_vm0, %v845_v4  ;;  %805 = vmatmul.msk.bf16.gmra.mxu3 %vm311_vm0, %v850_v7 }
  0x31   : > { %612 = vmatpush.bf16.msra.mxu1 %v855_v18  ;;  %874 = vmatpush.bf16.msra.mxu2 %v855_v18 }
  0x3f   : > { %801 = vmatmul.msk.bf16.gmra.mxu0 %vm311_vm0, %v846_v6  ;;  %806 = vmatmul.msk.bf16.gmra.mxu3 %vm311_vm0, %v851_v9 }
  0x4f   : > { %802 = vmatmul.msk.bf16.gmra.mxu0 %vm311_vm0, %v847_v8 }
  0x5f   : > { %803 = vmatmul.msk.bf16.gmra.mxu0 %vm311_vm0, %v848_v10 }
  0x9c   : > { %v345_v20 = vpop.f32.mrf.mxu0 }
  0x9d   : > { %v346_v21 = vadd.f32 %v1142_v19, %v345_v20 }
  0x9f   : > { %v401_v22 = vmul.f32 0.044715, %v346_v21  ;;  %v385_v46 = vmul.f32 0.5, %v346_v21 }
  0xa1   : > { %v417_v23 = vmul.f32 %v401_v22, %v346_v21 }
  0xa2   : > { %v370_v17 = vpop.f32.mrf.mxu3 }
  0xa3   : > { %v433_v24 = vmul.f32 %v417_v23, %v346_v21 }
  0xa4   : > { %v347_v25 = vpop.f32.mrf.mxu0 }
  0xa5   : > { %v348_v26 = vadd.f32 %v1142_v19, %v347_v25  ;;  %v449_v27 = vadd.f32 %v433_v24, %v346_v21 }
  0xa7   : > { %v402_v28 = vmul.f32 0.044715, %v348_v26  ;;  %v465_v30 = vmul.f32 0.7978846, %v449_v27  ;;  %v386_v47 = vmul.f32 0.5, %v348_v26 }
  0xa9   : > { %v418_v29 = vmul.f32 %v402_v28, %v348_v26  ;;  %918 = vtanh.f32 %v465_v30 }
  0xaa   : > { %v372_v30 = vpop.f32.mrf.mxu3 }
  0xab   : > { %v434_v31 = vmul.f32 %v418_v29, %v348_v26 }
  0xac   : > { %v350_v32 = vpop.f32.mrf.mxu0 }
  0xad   : > { %v351_v33 = vadd.f32 %v1142_v19, %v350_v32  ;;  %v450_v34 = vadd.f32 %v434_v31, %v348_v26 }
  0xaf   : > { %v403_v35 = vmul.f32 0.044715, %v351_v33  ;;  %v466_v36 = vmul.f32 0.7978846, %v450_v34  ;;  %v919_v38 = vpop.eup %918  ;;  %v387_v5 = vmul.f32 0.5, %v351_v33 }
  0xb0   : > { %v497_v43 = vadd.f32 1.0, %v919_v38 }
  0xb1   : > { %920 = vtanh.f32 %v466_v36  ;;  %v419_v37 = vmul.f32 %v403_v35, %v351_v33 }
  0xb2   : > { %v513_v51 = vmul.f32 %v497_v43, %v385_v46  ;;  %v1154_v46 = vadd.f32 %v1142_v19, %v370_v17 }
  0xb3   : > { %v435_v39 = vmul.f32 %v419_v37, %v351_v33 }
  0xb4   : > { %v352_v40 = vpop.f32.mrf.mxu0 }
  0xb5   : > { %v353_v41 = vadd.f32 %v1142_v19, %v352_v40  ;;  %v451_v42 = vadd.f32 %v435_v39, %v351_v33 }
  0xb7   : > { %v921_v44 = vpop.eup %920  ;;  %v404_v45 = vmul.f32 0.044715, %v353_v41  ;;  %v467_v50 = vmul.f32 0.7978846, %v451_v42  ;;  %v388_v6 = vmul.f32 0.5, %v353_v41 }
  0xb8   : > { %v498_v48 = vadd.f32 1.0, %v921_v44 }
  0xb9   : > { %v420_v49 = vmul.f32 %v404_v45, %v353_v41  ;;  %922 = vtanh.f32 %v467_v50 }
  0xba   : > { %v514_v52 = vmul.f32 %v498_v48, %v386_v47  ;;  %v375_v47 = vpop.f32.mrf.mxu3 }
  0xbb   : > { %v436_v53 = vmul.f32 %v420_v49, %v353_v41  ;;  %v373_v49 = vadd.f32 %v1142_v19, %v372_v30 }
  0xbc   : > { %v355_v54 = vpop.f32.mrf.mxu0  ;;  %v529_v55 = vpack.c.bf16 %v514_v52, %v513_v51 }
  0xbd   : > { %v356_v56 = vadd.f32 %v1142_v19, %v355_v54  ;;  %v452_v57 = vadd.f32 %v436_v53, %v353_v41  ;;  %v411_v54 = vmul.f32 0.044715, %v1154_v46 }
  0xbe   : > { %613 = vmatmul.bf16.vlgmr.msra.gmra.mxu1 %v529_v55 }
  0xbf   : > { %v405_v58 = vmul.f32 0.044715, %v356_v56  ;;  %v468_v59 = vmul.f32 0.7978846, %v452_v57  ;;  %v923_v61 = vpop.eup %922  ;;  %v389_v31 = vmul.f32 0.5, %v356_v56 }
  0xc0   : > { %v499_v2 = vadd.f32 1.0, %v923_v61  ;;  %v412_v57 = vmul.f32 0.044715, %v373_v49 }
  0xc1   : > { %924 = vtanh.f32 %v468_v59  ;;  %v421_v60 = vmul.f32 %v405_v58, %v356_v56 }
  0xc2   : > { %v515_v10 = vmul.f32 %v499_v2, %v387_v5  ;;  %v427_v2 = vmul.f32 %v411_v54, %v1154_v46  ;;  %v377_v5 = vpop.f32.mrf.mxu3 }
  0xc3   : > { %v437_v62 = vmul.f32 %v421_v60, %v356_v56 }
  0xc4   : > { %v357_v63 = vpop.f32.mrf.mxu0 }
  0xc5   : > { %v358_v0 = vadd.f32 %v1142_v19, %v357_v63  ;;  %v453_v1 = vadd.f32 %v437_v62, %v356_v56 }
  0xc7   : > { %v925_v3 = vpop.eup %924  ;;  %v406_v4 = vmul.f32 0.044715, %v358_v0  ;;  %v469_v9 = vmul.f32 0.7978846, %v453_v1  ;;  %v390_v32 = vmul.f32 0.5, %v358_v0 }
  0xc8   : > { %v500_v7 = vadd.f32 1.0, %v925_v3 }
  0xc9   : > { %v422_v8 = vmul.f32 %v406_v4, %v358_v0  ;;  %926 = vtanh.f32 %v469_v9  ;;  %v428_v4 = vmul.f32 %v412_v57, %v373_v49 }
  0xca   : > { %v516_v11 = vmul.f32 %v500_v7, %v388_v6  ;;  %v380_v17 = vpop.f32.mrf.mxu3 }
  0xcb   : > { %v438_v12 = vmul.f32 %v422_v8, %v358_v0  ;;  %v443_v8 = vmul.f32 %v427_v2, %v1154_v46 }
  0xcc   : > { %v360_v13 = vpop.f32.mrf.mxu0  ;;  %v530_v14 = vpack.c.bf16 %v516_v11, %v515_v10  ;;  %v444_v10 = vmul.f32 %v428_v4, %v373_v49  ;;  %v376_v11 = vadd.f32 %v1142_v19, %v375_v47 }
  0xcd   : > { %v361_v15 = vadd.f32 %v1142_v19, %v360_v13  ;;  %v454_v16 = vadd.f32 %v438_v12, %v358_v0  ;;  %v459_v12 = vadd.f32 %v443_v8, %v1154_v46 }
  0xce   : > { %618 = vmatmul.bf16.gmra.mxu1 %v530_v14  ;;  %v378_v14 = vadd.f32 %v1142_v19, %v377_v5 }
  0xcf   : > { %v407_v18 = vmul.f32 0.044715, %v361_v15  ;;  %v470_v20 = vmul.f32 0.7978846, %v454_v16  ;;  %v927_v22 = vpop.eup %926  ;;  %v391_v59 = vmul.f32 0.5, %v361_v15 }
  0xd0   : > { %v501_v27 = vadd.f32 1.0, %v927_v22  ;;  %v413_v16 = vmul.f32 0.044715, %v376_v11  ;;  %v414_v22 = vmul.f32 0.044715, %v378_v14 }
  0xd1   : > { %928 = vtanh.f32 %v470_v20  ;;  %v423_v21 = vmul.f32 %v407_v18, %v361_v15  ;;  %v475_v20 = vmul.f32 0.7978846, %v459_v12 }
  0xd2   : > { %v517_v36 = vmul.f32 %v501_v27, %v389_v31  ;;  %v430_v30 = vmul.f32 %v414_v22, %v378_v14 }
  0xd3   : > { %v439_v23 = vmul.f32 %v423_v21, %v361_v15 }
  0xd4   : > { %v362_v24 = vpop.f32.mrf.mxu0 }
  0xd5   : > { %v363_v25 = vadd.f32 %v1142_v19, %v362_v24  ;;  %v455_v26 = vadd.f32 %v439_v23, %v361_v15  ;;  %v460_v15 = vadd.f32 %v444_v10, %v373_v49 }
  0xd7   : > { %v929_v28 = vpop.eup %928  ;;  %v408_v29 = vmul.f32 0.044715, %v363_v25  ;;  %v471_v35 = vmul.f32 0.7978846, %v455_v26  ;;  %v392_v60 = vmul.f32 0.5, %v363_v25 }
  0xd8   : > { %v502_v33 = vadd.f32 1.0, %v929_v28  ;;  %v476_v23 = vmul.f32 0.7978846, %v460_v15 }
  0xd9   : > { %v424_v34 = vmul.f32 %v408_v29, %v363_v25  ;;  %930 = vtanh.f32 %v471_v35  ;;  %v429_v29 = vmul.f32 %v413_v16, %v376_v11  ;;  %v382_v35 = vpop.f32.mrf.mxu3 }
  0xda   : > { %v518_v37 = vmul.f32 %v502_v33, %v390_v32  ;;  %v446_v33 = vmul.f32 %v430_v30, %v378_v14 }
  0xdb   : > { %v440_v38 = vmul.f32 %v424_v34, %v363_v25  ;;  %v445_v32 = vmul.f32 %v429_v29, %v376_v11 }
  0xdc   : > { %v365_v39 = vpop.f32.mrf.mxu0  ;;  %v531_v40 = vpack.c.bf16 %v518_v37, %v517_v36  ;;  %v381_v37 = vadd.f32 %v1142_v19, %v380_v17 }
  0xdd   : > { %v366_v41 = vadd.f32 %v1142_v19, %v365_v39  ;;  %v456_v42 = vadd.f32 %v440_v38, %v363_v25  ;;  %v461_v38 = vadd.f32 %v445_v32, %v376_v11  ;;  %v383_v39 = vadd.f32 %v1142_v19, %v382_v35 }
  0xde   : > { %623 = vmatmul.bf16.gmra.mxu1 %v531_v40  ;;  %v462_v40 = vadd.f32 %v446_v33, %v378_v14 }
  0xdf   : > { %v409_v43 = vmul.f32 0.044715, %v366_v41  ;;  %v472_v44 = vmul.f32 0.7978846, %v456_v42  ;;  %v931_v48 = vpop.eup %930  ;;  %v393_v24 = vmul.f32 0.5, %v366_v41  ;;  %v396_v42 = vmul.f32 0.5, %v373_v49 }
  0xe0   : > { %v503_v55 = vadd.f32 1.0, %v931_v48  ;;  %v477_v47 = vmul.f32 0.7978846, %v461_v38  ;;  %v416_v48 = vmul.f32 0.044715, %v383_v39 }
  0xe1   : > { %932 = vtanh.f32 %v472_v44  ;;  %v425_v45 = vmul.f32 %v409_v43, %v366_v41 }
  0xe2   : > { %v519_v0 = vmul.f32 %v503_v55, %v391_v59  ;;  %v432_v54 = vmul.f32 %v416_v48, %v383_v39  ;;  %v397_v59 = vmul.f32 0.5, %v376_v11 }
  0xe3   : > { %v441_v50 = vmul.f32 %v425_v45, %v366_v41  ;;  %v415_v45 = vmul.f32 0.044715, %v381_v37 }
  0xe4   : > { %v367_v51 = vpop.f32.mrf.mxu0 }
  0xe5   : > { %v368_v52 = vadd.f32 %v1142_v19, %v367_v51  ;;  %v457_v53 = vadd.f32 %v441_v50, %v366_v41  ;;  %v395_v41 = vmul.f32 0.5, %v1154_v46  ;;  %v478_v50 = vmul.f32 0.7978846, %v462_v40 }
  0xe6   : > { %v448_v19 = vmul.f32 %v432_v54, %v383_v39 }
  0xe7   : > { %v933_v56 = vpop.eup %932  ;;  %v410_v58 = vmul.f32 0.044715, %v368_v52  ;;  %v473_v63 = vmul.f32 0.7978846, %v457_v53  ;;  %v394_v25 = vmul.f32 0.5, %v368_v52  ;;  %v431_v53 = vmul.f32 %v415_v45, %v381_v37 }
  0xe8   : > { %v504_v61 = vadd.f32 1.0, %v933_v56  ;;  %v464_v49 = vadd.f32 %v448_v19, %v383_v39 }
  0xe9   : > { %v426_v62 = vmul.f32 %v410_v58, %v368_v52  ;;  %934 = vtanh.f32 %v473_v63  ;;  %v447_v56 = vmul.f32 %v431_v53, %v381_v37 }
  0xea   : > { %v520_v1 = vmul.f32 %v504_v61, %v392_v60  ;;  %v398_v60 = vmul.f32 0.5, %v378_v14 }
  0xeb   : > { %v442_v3 = vmul.f32 %v426_v62, %v368_v52  ;;  %v463_v46 = vadd.f32 %v447_v56, %v381_v37 }
  0xec   : > { %v532_v6 = vpack.c.bf16 %v520_v1, %v519_v0  ;;  %v480_v0 = vmul.f32 0.7978846, %v464_v49 }
  0xed   : > { %v458_v7 = vadd.f32 %v442_v3, %v368_v52  ;;  %v479_v63 = vmul.f32 0.7978846, %v463_v46 }
  0xee   : > { %628 = vmatmul.bf16.gmra.mxu1 %v532_v6  ;;  %v399_v6 = vmul.f32 0.5, %v381_v37 }
  0xef   : > { %v474_v9 = vmul.f32 0.7978846, %v458_v7  ;;  %v935_v13 = vpop.eup %934  ;;  %v400_v7 = vmul.f32 0.5, %v383_v39 }
  0xf0   : > { %v505_v18 = vadd.f32 1.0, %v935_v13  ;;  %v917_v13 = vld [vmem:[%s1245_s4] ss:$0 sm:$0xff] }
  0xf1   : > { %936 = vtanh.f32 %v474_v9 }
  0xf2   : > { %v521_v27 = vmul.f32 %v505_v18, %v393_v24  ;;  %938 = vtanh.f32 %v475_v20 }
  0xf3   : > { %940 = vtanh.f32 %v476_v23 }
  0xf4   : > { %942 = vtanh.f32 %v477_v47 }
  0xf5   : > { %944 = vtanh.f32 %v478_v50 }
  0xf6   : > { %946 = vtanh.f32 %v479_v63 }
  0xf7   : > { %v937_v21 = vpop.eup %936  ;;  %948 = vtanh.f32 %v480_v0 }
  0xf8   : > { %v506_v26 = vadd.f32 1.0, %v937_v21  ;;  %v939_v34 = vpop.eup %938 }
  0xf9   : > { %v941_v36 = vpop.eup %940  ;;  %v507_v43 = vadd.f32 1.0, %v939_v34 }
  0xfa   : > { %v522_v28 = vmul.f32 %v506_v26, %v394_v25  ;;  %v508_v44 = vadd.f32 1.0, %v941_v36  ;;  %v943_v57 = vpop.eup %942 }
  0xfb   : > { %v523_v51 = vmul.f32 %v507_v43, %v395_v41  ;;  %v945_v58 = vpop.eup %944  ;;  %v509_v61 = vadd.f32 1.0, %v943_v57 }
  0xfc   : > { %v533_v31 = vpack.c.bf16 %v522_v28, %v521_v27  ;;  %v524_v52 = vmul.f32 %v508_v44, %v396_v42  ;;  %v510_v62 = vadd.f32 1.0, %v945_v58  ;;  %v947_v4 = vpop.eup %946 }
  0xfd   : > { %v525_v1 = vmul.f32 %v509_v61, %v397_v59  ;;  %v949_v5 = vpop.eup %948  ;;  %v511_v8 = vadd.f32 1.0, %v947_v4 }
  0xfe   : > { %633 = vmatmul.bf16.vlgmr.msra.gmra.mxu2 %v533_v31  ;;  %v534_v55 = vpack.c.bf16 %v524_v52, %v523_v51  ;;  %v526_v2 = vmul.f32 %v510_v62, %v398_v60  ;;  %v512_v9 = vadd.f32 1.0, %v949_v5 }
  0xff   : > { %v527_v10 = vmul.f32 %v511_v8, %v399_v6 }
 0x100   : > { %v535_v3 = vpack.c.bf16 %v526_v2, %v525_v1  ;;  %v528_v11 = vmul.f32 %v512_v9, %v400_v7 }
 0x102   : > { %v536_v12 = vpack.c.bf16 %v528_v11, %v527_v10 }
 0x10e   : > { %638 = vmatmul.bf16.gmra.mxu2 %v534_v55 }
 0x11e   : > { %643 = vmatmul.bf16.gmra.mxu2 %v535_v3 }
 0x12e   : > { %648 = vmatmul.bf16.gmra.mxu2 %v536_v12 }
 0x13b   : > { %v614_v14 = vpop.f32.mrf.mxu1 }
 0x13c   : > { %v615_v15 = vadd.f32 %v917_v13, %v614_v14 }
 0x13e   : > { %654 = vst.msk [vmem:[%s1173_s6] sm:$0xff] %vm311_vm0, %v615_v15 }
 0x143   : > { %v616_v16 = vpop.f32.mrf.mxu1 }
 0x144   : > { %v617_v17 = vadd.f32 %v917_v13, %v616_v16 }
 0x146   : > { %655 = vst.msk [vmem:[%s1173_s6 + $0x8] sm:$0xff] %vm311_vm0, %v617_v17 }
 0x14b   : > { %v619_v18 = vpop.f32.mrf.mxu1 }
 0x14c   : > { %v620_v20 = vadd.f32 %v917_v13, %v619_v18 }
 0x14e   : > { %656 = vst.msk [vmem:[%s1173_s6 + $0x10] sm:$0xff] %vm311_vm0, %v620_v20 }
 0x153   : > { %v621_v21 = vpop.f32.mrf.mxu1 }
 0x154   : > { %v622_v22 = vadd.f32 %v917_v13, %v621_v21 }
 0x156   : > { %657 = vst.msk [vmem:[%s1173_s6 + $0x18] sm:$0xff] %vm311_vm0, %v622_v22 }
 0x15b   : > { %v624_v23 = vpop.f32.mrf.mxu1 }
 0x15c   : > { %v625_v24 = vadd.f32 %v917_v13, %v624_v23 }
 0x15e   : > { %658 = vst.msk [vmem:[%s1173_s6 + $0x20] sm:$0xff] %vm311_vm0, %v625_v24 }
 0x163   : > { %v626_v25 = vpop.f32.mrf.mxu1 }
 0x164   : > { %v627_v26 = vadd.f32 %v917_v13, %v626_v25 }
 0x166   : > { %659 = vst.msk [vmem:[%s1173_s6 + $0x28] sm:$0xff] %vm311_vm0, %v627_v26 }
 0x16b   : > { %v629_v27 = vpop.f32.mrf.mxu1 }
 0x16c   : > { %v630_v28 = vadd.f32 %v917_v13, %v629_v27 }
 0x16e   : > { %660 = vst.msk [vmem:[%s1173_s6 + $0x30] sm:$0xff] %vm311_vm0, %v630_v28 }
 0x173   : > { %v631_v29 = vpop.f32.mrf.mxu1 }
 0x174   : > { %v632_v30 = vadd.f32 %v917_v13, %v631_v29 }
 0x176   : > { %661 = vst.msk [vmem:[%s1173_s6 + $0x38] sm:$0xff] %vm311_vm0, %v632_v30 }
 0x181   : > { %v634_v31 = vpop.f32.mrf.mxu2 }
 0x182   : > { %v635_v32 = vadd.f32 %v917_v13, %v634_v31 }
 0x184   : > { %662 = vst.msk [vmem:[%s1173_s6 + $0x40] sm:$0xff] %vm311_vm0, %v635_v32 }
 0x189   : > { %v636_v33 = vpop.f32.mrf.mxu2 }
 0x18a   : > { %v637_v34 = vadd.f32 %v917_v13, %v636_v33 }
 0x18c   : > { %663 = vst.msk [vmem:[%s1173_s6 + $0x48] sm:$0xff] %vm311_vm0, %v637_v34 }
 0x191   : > { %v639_v35 = vpop.f32.mrf.mxu2 }
 0x192   : > { %v640_v36 = vadd.f32 %v917_v13, %v639_v35 }
 0x194   : > { %664 = vst.msk [vmem:[%s1173_s6 + $0x50] sm:$0xff] %vm311_vm0, %v640_v36 }
 0x199   : > { %v641_v37 = vpop.f32.mrf.mxu2 }
 0x19a   : > { %v642_v38 = vadd.f32 %v917_v13, %v641_v37 }
 0x19c   : > { %665 = vst.msk [vmem:[%s1173_s6 + $0x58] sm:$0xff] %vm311_vm0, %v642_v38 }
 0x1a1   : > { %v644_v39 = vpop.f32.mrf.mxu2 }
 0x1a2   : > { %v645_v40 = vadd.f32 %v917_v13, %v644_v39 }
 0x1a4   : > { %666 = vst.msk [vmem:[%s1173_s6 + $0x60] sm:$0xff] %vm311_vm0, %v645_v40 }
 0x1a9   : > { %v646_v41 = vpop.f32.mrf.mxu2 }
 0x1aa   : > { %v647_v42 = vadd.f32 %v917_v13, %v646_v41 }
 0x1ac   : > { %667 = vst.msk [vmem:[%s1173_s6 + $0x68] sm:$0xff] %vm311_vm0, %v647_v42 }
 0x1b1   : > { %v649_v43 = vpop.f32.mrf.mxu2 }
 0x1b2   : > { %v650_v44 = vadd.f32 %v917_v13, %v649_v43 }
 0x1b4   : > { %668 = vst.msk [vmem:[%s1173_s6 + $0x70] sm:$0xff] %vm311_vm0, %v650_v44 }
 0x1b9   : > { %v651_v45 = vpop.f32.mrf.mxu2 }
 0x1ba   : > { %v652_v47 = vadd.f32 %v917_v13, %v651_v45 }
 0x1bc   : > { %669 = vst.msk [vmem:[%s1173_s6 + $0x78] sm:$0xff] %vm311_vm0, %v652_v47 }
 0x1bd   : > { %977 = shalt.err (!%p974_p3)
}
 0x1be   : > { %s1014_s23 = smov 128   ;;  %s1015_s30 = smov 8  }
 0x1bf   : > { %875 = dma.vmem_to_hbm [thread:$0]  (%p1084_p5), %s684_s11, 2048, %s686_s12, %s671_s13, %s1014_s23, %s1014_s23, %s1015_s30  }
 0x1c0 PF: > { %p881_p4 = scmp.ge.s32.totalorder %s1012_s21, 2  ;;  %s700_s6 = sand.u32 1, %s1000_s18  }
 0x1c1   : > { %s701_s7 = scalar_lea.sflag [#allocation3], %s700_s6 }
 0x1c2   : > { %p878_p7 = pnand %p881_p4, %p1088_p6 }
 0x1c4   : > { %p879_p8 = pneg %p878_p7 }
 0x1c6   : > { %995 = dma.done.wait (%p879_p8), %s701_s7, 2048  }
 0x1c7   : > { %997 = vsyncadd (%p879_p8), %s701_s7, 4294965248  ;;  %p15_p9 = scmp.ge.s32.totalorder %s1071_s24, 10   ;;  %s1249_s18 = smov %s1004_s19 }
 0x1c8   : > { %s1250_s19 = smov %s1008_s20  ;;  %s1251_s20 = smov %s1082_s27 }
 0x1c9   : > { %s1252_s21 = smov %s1071_s24  ;;  %17 = sbr.rel (!%p15_p9) target bundleno = 3 (0x3), region = 75 }
 0x1ce   :  { %707 = vsyncpa [#allocation3], 1 }
 0x1cf   :  { %709 = vsyncpa [#allocation3 + $0x1], 1 }

</bundles_post_ra>
